<compile_context>
chip_gen: v7x
topology: tpu7x:2x2x1
jax: 0.10.0
libtpu: 0.0.40
codegen_flags: <defaults>
</compile_context>

<pallas_src>
import functools

import jax
import jax.numpy as jnp
from jax.experimental import pallas as pl
from jax.experimental.pallas import tpu as pltpu

_MiB = 1024 * 1024


def _round_up(v, m):
    return (v + m - 1) // m * m


def _cdiv(a, b):
    return (a + b - 1) // b


def _device_vmem_bytes():
    try:
        cap = getattr(pltpu.get_tpu_info(), "vmem_capacity_bytes", None)
        if cap:
            return int(cap)
    except Exception:
        pass
    return 64 * _MiB  # conservative default (v7x-sized); v5e/v6e just use less


def _device_kind():
    try:
        return jax.devices()[0].device_kind.lower()
    except Exception:
        return ""


# ----------------------------------------------------------------------------- kernels


def _ffn_ln_resident_kernel(x_ref, w1_ref, b1_ref, w2_ref, b2_ref, g_ref, beta_ref,
                            o_ref, *, eps):
    """Weights fully resident in VMEM: one grid axis over row tiles, no accumulator."""
    x = x_ref[...]                                     # (tm, D) f32
    xb = x.astype(jnp.bfloat16)

    h = jnp.dot(xb, w1_ref[...], preferred_element_type=jnp.float32)    # (tm, H)
    h = jnp.maximum(h + b1_ref[...], 0.0)

    y = jnp.dot(h.astype(jnp.bfloat16), w2_ref[...],
                preferred_element_type=jnp.float32)                     # (tm, D)

    z = x + y + b2_ref[...]                            # residual: idx + net(idx)
    mean = jnp.mean(z, axis=-1, keepdims=True)
    centered = z - mean
    var = jnp.mean(centered * centered, axis=-1, keepdims=True)
    zn = centered * jax.lax.rsqrt(var + eps)
    o_ref[...] = (zn * g_ref[...] + beta_ref[...]).astype(o_ref.dtype)


def _ffn_ln_streamed_kernel(x_ref, w1_ref, b1_ref, w2_ref, b2_ref, g_ref, beta_ref,
                            o_ref, acc_ref, xb_ref, *, eps):
    """Hidden dim tiled on a trailing 'arbitrary' reduction axis; f32 VMEM accumulator."""
    k = pl.program_id(1)

    @pl.when(k == 0)
    def _init():
        acc_ref[...] = jnp.zeros_like(acc_ref)
        # Hoisted cast of the (resident-across-k) x tile: done once per row tile.
        xb_ref[...] = x_ref[...].astype(jnp.bfloat16)

    # First matmul (bf16 in, f32 accum) + bias + ReLU for this H block.
    h = jnp.dot(xb_ref[...], w1_ref[...], preferred_element_type=jnp.float32)  # (tm, th)
    h = jnp.maximum(h + b1_ref[...], 0.0)

    # Second matmul contribution of this H block, accumulated in f32.
    acc_ref[...] += jnp.dot(h.astype(jnp.bfloat16), w2_ref[...],
                            preferred_element_type=jnp.float32)                # (tm, D)

    @pl.when(k == pl.num_programs(1) - 1)
    def _finalize():
        z = x_ref[...].astype(jnp.float32) + acc_ref[...] + b2_ref[...]
        mean = jnp.mean(z, axis=-1, keepdims=True)
        centered = z - mean
        var = jnp.mean(centered * centered, axis=-1, keepdims=True)
        zn = centered * jax.lax.rsqrt(var + eps)
        o_ref[...] = (zn * g_ref[...] + beta_ref[...]).astype(o_ref.dtype)


# ----------------------------------------------------------------------------- wrapper


def feed_forward_pallas(x, w1, b1, w2, b2, gamma, beta, *, eps=1e-5, tm=None,
                        force_th=None):
    """x: (B, T, D) float32.  w1: (D, H), w2: (H, D).  Returns (B, T, D)."""
    B, T, D = x.shape
    H = w1.shape[1]
    M = B * T
    x2 = x.reshape(M, D).astype(jnp.float32)

    vmem_cap = _device_vmem_bytes()
    budget = max(vmem_cap - 8 * _MiB, 24 * _MiB)

    # ---- hidden-dim tiling: weight-resident fast path when both bf16 weights fit. ----
    w_total_bytes = 2 * D * H * 2                      # W1 + W2 in bf16
    resident = (force_th is None) and (w_total_bytes <= vmem_cap // 3)
    if resident:
        th, H_pad = H, H
    else:
        if force_th is not None:
            th = int(force_th)
        else:
            th = None
            for cand in (1024, 512, 256):              # prefer 256-multiples (256-wide MXU)
                if H % cand == 0:
                    th = cand
                    break
            if th is None:
                th = 128 if H % 128 == 0 else 256      # pad H otherwise
        H_pad = _round_up(H, th)

    # ---- row tiling ----
    if tm is None:
        kind = _device_kind()
        streaming = not resident
        # When streaming weights, per-k arithmetic intensity = tm flop/weight-byte; raise tm
        # above the HBM ridge on big-VMEM non-v5 chips (v6e).  v5e stays compute-bound at 512.
        cap_tm = 1024 if (streaming and vmem_cap >= 100 * _MiB and "v5" not in kind) else 512
        # >= 2 row tiles whenever M allows, so the parallel axis shards across 2 TCs (v7x).
        tm = min(cap_tm, _round_up(max(_cdiv(M, 2), 8), 8))
    tm = max(8, _round_up(tm, 8))

    def vmem_est(tm_, th_):
        x_io = 2 * 2 * tm_ * D * 4                                 # x + out tiles, 2 bufs, f32
        w = 2 * (D * th_ + th_ * D) * 2                            # W1 + W2 blocks, 2 bufs, bf16
        scratch = 0 if resident else (tm_ * D * 4 + tm_ * D * 2)   # acc f32 + xb bf16
        bias = 2 * (th_ * 4 + 3 * D * 4)
        interm = tm_ * th_ * 4                                     # h intermediate
        return x_io + w + scratch + bias + interm

    # Shrink (th, tm) until the double-buffered pipeline fits the device budget.
    while vmem_est(tm, th) > budget:
        if (not resident) and th > 256 and H_pad % (th // 2) == 0:
            th //= 2
        elif tm > 128:
            tm = max(128, _round_up(tm // 2, 8))
        elif resident:
            # Weights too large to keep resident alongside the row tiles: stream them.
            resident = False
            th = next((c for c in (512, 256, 128) if H % c == 0), 256)
            H_pad = _round_up(H, th)
        else:
            break

    grid_m = _cdiv(M, tm)
    M_pad = grid_m * tm
    if M_pad != M:
        x2 = jnp.pad(x2, ((0, M_pad - M), (0, 0)))
    grid_h = H_pad // th

    # Zero-pad hidden dim if needed (padded columns/rows contribute exactly zero).
    w1p, b1p, w2p = w1, b1, w2
    if H_pad != H:
        w1p = jnp.pad(w1, ((0, 0), (0, H_pad - H)))
        b1p = jnp.pad(b1, ((0, H_pad - H),))
        w2p = jnp.pad(w2, ((0, H_pad - H), (0, 0)))

    # bf16 MXU operands for the weights; biases / LN params stay f32 (applied post-accum).
    w1_bf = w1p.astype(jnp.bfloat16)
    w2_bf = w2p.astype(jnp.bfloat16)
    b1_2 = b1p.reshape(1, H_pad).astype(jnp.float32)
    b2_2 = b2.reshape(1, D).astype(jnp.float32)
    g_2 = gamma.reshape(1, D).astype(jnp.float32)
    beta_2 = beta.reshape(1, D).astype(jnp.float32)

    if resident and grid_h == 1:
        kernel = functools.partial(_ffn_ln_resident_kernel, eps=eps)
        grid = (grid_m,)
        in_specs = [
            pl.BlockSpec((tm, D), lambda i: (i, 0)),        # x tile
            pl.BlockSpec((D, H_pad), lambda i: (0, 0)),     # W1 (resident, DMA'd once)
            pl.BlockSpec((1, H_pad), lambda i: (0, 0)),     # b1
            pl.BlockSpec((H_pad, D), lambda i: (0, 0)),     # W2 (resident)
            pl.BlockSpec((1, D), lambda i: (0, 0)),         # b2
            pl.BlockSpec((1, D), lambda i: (0, 0)),         # LN gamma
            pl.BlockSpec((1, D), lambda i: (0, 0)),         # LN beta
        ]
        out_specs = pl.BlockSpec((tm, D), lambda i: (i, 0))
        scratch_shapes = []
        dims = ("parallel",)
        w_hbm_bytes = 2 * D * H_pad * 2                    # weights read once
    else:
        kernel = functools.partial(_ffn_ln_streamed_kernel, eps=eps)
        grid = (grid_m, grid_h)
        in_specs = [
            pl.BlockSpec((tm, D), lambda i, k: (i, 0)),     # x tile (resident across k)
            pl.BlockSpec((D, th), lambda i, k: (0, k)),     # W1 block (bf16)
            pl.BlockSpec((1, th), lambda i, k: (0, k)),     # b1 block
            pl.BlockSpec((th, D), lambda i, k: (k, 0)),     # W2 block (bf16)
            pl.BlockSpec((1, D), lambda i, k: (0, 0)),      # b2
            pl.BlockSpec((1, D), lambda i, k: (0, 0)),      # LN gamma
            pl.BlockSpec((1, D), lambda i, k: (0, 0)),      # LN beta
        ]
        out_specs = pl.BlockSpec((tm, D), lambda i, k: (i, 0))   # resident across k
        scratch_shapes = [pltpu.VMEM((tm, D), jnp.float32),      # f32 accumulator
                          pltpu.VMEM((tm, D), jnp.bfloat16)]     # hoisted bf16 x tile
        dims = ("parallel", "arbitrary")
        w_hbm_bytes = grid_m * 2 * D * H_pad * 2           # weights re-streamed per row tile

    est = vmem_est(tm, th)
    vmem_limit = int(min(budget, max(48 * _MiB, 2 * est)))

    cost = pl.CostEstimate(
        flops=4 * M_pad * D * H_pad + 10 * M_pad * D,
        transcendentals=M_pad,
        bytes_accessed=w_hbm_bytes + 2 * M_pad * D * 4 + (H_pad + 3 * D) * 4,
    )

    out2 = pl.pallas_call(
        kernel,
        out_shape=jax.ShapeDtypeStruct((M_pad, D), x.dtype),
        grid_spec=pltpu.PrefetchScalarGridSpec(
            num_scalar_prefetch=0,
            grid=grid,
            in_specs=in_specs,
            out_specs=out_specs,
            scratch_shapes=scratch_shapes,
        ),
        compiler_params=pltpu.CompilerParams(
            dimension_semantics=dims,
            vmem_limit_bytes=vmem_limit,
        ),
        cost_estimate=cost,
    )(x2, w1_bf, b1_2, w2_bf, b2_2, g_2, beta_2)

    if M_pad != M:
        out2 = out2[:M]
    return out2.reshape(B, T, D)


# --------------------------------------------------------------------------- references


def reference_bf16(x, w1, b1, w2, b2, gamma, beta, eps=1e-5):
    """Mirrors the kernel's precision: bf16 MXU operands, f32 accumulation / LN."""
    xb = x.astype(jnp.bfloat16)
    h = jnp.dot(xb, w1.astype(jnp.bfloat16), preferred_element_type=jnp.float32) + b1
    h = jnp.maximum(h, 0.0)
    y = jnp.dot(h.astype(jnp.bfloat16), w2.astype(jnp.bfloat16),
                preferred_element_type=jnp.float32) + b2
    z = x.astype(jnp.float32) + y
    mean = jnp.mean(z, axis=-1, keepdims=True)
    var = jnp.mean((z - mean) ** 2, axis=-1, keepdims=True)
    return (z - mean) / jnp.sqrt(var + eps) * gamma + beta


def reference_f32(x, w1, b1, w2, b2, gamma, beta, eps=1e-5):
    h = jnp.maximum(x @ w1 + b1, 0.0)
    y = h @ w2 + b2
    z = x + y
    mean = jnp.mean(z, axis=-1, keepdims=True)
    var = jnp.mean((z - mean) ** 2, axis=-1, keepdims=True)
    return (z - mean) / jnp.sqrt(var + eps) * gamma + beta


def _make_params(key, D, H):
    k1, kb1, k2, kb2 = jax.random.split(key, 4)
    w1 = jax.random.normal(k1, (D, H), dtype=jnp.float32) * (1.0 / jnp.sqrt(D))
    b1 = jax.random.normal(kb1, (H,), dtype=jnp.float32) * 0.01
    w2 = jax.random.normal(k2, (H, D), dtype=jnp.float32) * (1.0 / jnp.sqrt(H))
    b2 = jax.random.normal(kb2, (D,), dtype=jnp.float32) * 0.01
    gamma = jnp.ones((D,), dtype=jnp.float32)    # LayerNorm default weight
    beta = jnp.zeros((D,), dtype=jnp.float32)    # LayerNorm default bias
    return w1, b1, w2, b2, gamma, beta


if __name__ == "__main__":
    key = jax.random.PRNGKey(0)
    key_a, key_b, kxa, kxb = jax.random.split(key, 4)

    # --- Test 1: module-sized toy shapes (n_embd=32, hidden=4*32) -> weight-resident path.
    B, T, D = 2, 8, 32
    H = 4 * D
    x = jax.random.normal(kxa, (B, T, D), dtype=jnp.float32)
    params = _make_params(key_a, D, H)

    out = jax.block_until_ready(feed_forward_pallas(x, *params))
    assert out.shape == (B, T, D)
    assert jnp.allclose(out, reference_bf16(x, *params), atol=2e-3, rtol=2e-3), \
        "resident path: mismatch vs bf16-matched reference"
    assert jnp.allclose(out, reference_f32(x, *params), atol=5e-2, rtol=5e-2), \
        "resident path: mismatch vs f32 reference"

    # --- Test 2: exercise the streamed (grid_h > 1) reduction path with forced H tiling.
    B2, T2, D2 = 2, 16, 128
    H2 = 4 * D2
    x2 = jax.random.normal(kxb, (B2, T2, D2), dtype=jnp.float32)
    params2 = _make_params(key_b, D2, H2)

    out2 = jax.block_until_ready(feed_forward_pallas(x2, *params2, force_th=256))
    assert out2.shape == (B2, T2, D2)
    assert jnp.allclose(out2, reference_bf16(x2, *params2), atol=2e-3, rtol=2e-3), \
        "streamed path: mismatch vs bf16-matched reference"
    assert jnp.allclose(out2, reference_f32(x2, *params2), atol=5e-2, rtol=5e-2), \
        "streamed path: mismatch vs f32 reference"

    print("KERNEL_OK")
</pallas_src>

<mosaic_0001>
module attributes {stable_mosaic.version = 11 : i64} {
  func.func @_ffn_ln_resident_kernel(%arg0: i32, %arg1: memref<8x32xf32, #tpu.memory_space<vmem>>, %arg2: memref<32x128xbf16, #tpu.memory_space<vmem>>, %arg3: memref<1x128xf32, #tpu.memory_space<vmem>>, %arg4: memref<128x32xbf16, #tpu.memory_space<vmem>>, %arg5: memref<1x32xf32, #tpu.memory_space<vmem>>, %arg6: memref<1x32xf32, #tpu.memory_space<vmem>>, %arg7: memref<1x32xf32, #tpu.memory_space<vmem>>, %arg8: memref<8x32xf32, #tpu.memory_space<vmem>>) attributes {dimension_semantics = [#tpu.dimension_semantics<parallel>], iteration_bounds = array<i64: 2>, scalar_prefetch = 0 : i64, scratch_operands = 0 : i64, tpu.core_type = #tpu.core_type<tc>, window_params = [{transform_indices = @transform_0, window_bounds = array<i64: 8, 32>}, {pipeline_mode = #tpu.pipeline_mode<synchronous>, transform_indices = @transform_1, window_bounds = array<i64: 32, 128>}, {pipeline_mode = #tpu.pipeline_mode<synchronous>, transform_indices = @transform_2, window_bounds = array<i64: 1, 128>}, {pipeline_mode = #tpu.pipeline_mode<synchronous>, transform_indices = @transform_3, window_bounds = array<i64: 128, 32>}, {pipeline_mode = #tpu.pipeline_mode<synchronous>, transform_indices = @transform_4, window_bounds = array<i64: 1, 32>}, {pipeline_mode = #tpu.pipeline_mode<synchronous>, transform_indices = @transform_5, window_bounds = array<i64: 1, 32>}, {pipeline_mode = #tpu.pipeline_mode<synchronous>, transform_indices = @transform_6, window_bounds = array<i64: 1, 32>}, {transform_indices = @transform_7, window_bounds = array<i64: 8, 32>}]} {
    %c0 = arith.constant 0 : index
    %c0_0 = arith.constant 0 : index
    %0 = vector.load %arg1[%c0, %c0_0] : memref<8x32xf32, #tpu.memory_space<vmem>>, vector<8x32xf32>
    %1 = arith.truncf %0 : vector<8x32xf32> to vector<8x32xbf16>
    %c0_1 = arith.constant 0 : index
    %c0_2 = arith.constant 0 : index
    %2 = vector.load %arg2[%c0_1, %c0_2] : memref<32x128xbf16, #tpu.memory_space<vmem>>, vector<32x128xbf16>
    %cst = arith.constant dense<0.000000e+00> : vector<8x128xf32>
    %3 = tpu.matmul %1, %2, %cst {dimension_numbers = #tpu.dot_dimension_numbers<[1], [0], [0], [1], [0, 0, 1, 1], [], []>} : vector<8x32xbf16>, vector<32x128xbf16>, vector<8x128xf32> -> vector<8x128xf32>
    %c0_3 = arith.constant 0 : index
    %c0_4 = arith.constant 0 : index
    %4 = vector.load %arg3[%c0_3, %c0_4] : memref<1x128xf32, #tpu.memory_space<vmem>>, vector<1x128xf32>
    %5 = vector.broadcast %4 : vector<1x128xf32> to vector<8x128xf32>
    %6 = arith.addf %3, %5 : vector<8x128xf32>
    %cst_5 = arith.constant 0.000000e+00 : f32
    %7 = vector.broadcast %cst_5 : f32 to vector<8x128xf32>
    %8 = arith.maximumf %6, %7 : vector<8x128xf32>
    %9 = arith.truncf %8 : vector<8x128xf32> to vector<8x128xbf16>
    %c0_6 = arith.constant 0 : index
    %c0_7 = arith.constant 0 : index
    %10 = vector.load %arg4[%c0_6, %c0_7] : memref<128x32xbf16, #tpu.memory_space<vmem>>, vector<128x32xbf16>
    %cst_8 = arith.constant dense<0.000000e+00> : vector<8x32xf32>
    %11 = tpu.matmul %9, %10, %cst_8 {dimension_numbers = #tpu.dot_dimension_numbers<[1], [0], [0], [1], [0, 0, 1, 1], [], []>} : vector<8x128xbf16>, vector<128x32xbf16>, vector<8x32xf32> -> vector<8x32xf32>
    %12 = arith.addf %0, %11 : vector<8x32xf32>
    %c0_9 = arith.constant 0 : index
    %c0_10 = arith.constant 0 : index
    %13 = vector.load %arg5[%c0_9, %c0_10] : memref<1x32xf32, #tpu.memory_space<vmem>>, vector<1x32xf32>
    %14 = vector.broadcast %13 : vector<1x32xf32> to vector<8x32xf32>
    %15 = arith.addf %12, %14 : vector<8x32xf32>
    %cst_11 = arith.constant dense<0.000000e+00> : vector<8xf32>
    %16 = vector.multi_reduction <add>, %15, %cst_11 [1] : vector<8x32xf32> to vector<8xf32>
    %17 = vector.shape_cast %16 : vector<8xf32> to vector<8x1xf32>
    %cst_12 = arith.constant 3.200000e+01 : f32
    %18 = vector.broadcast %cst_12 : f32 to vector<8x1xf32>
    %19 = arith.divf %17, %18 : vector<8x1xf32>
    %20 = vector.broadcast %19 : vector<8x1xf32> to vector<8x32xf32>
    %21 = arith.subf %15, %20 : vector<8x32xf32>
    %22 = arith.mulf %21, %21 : vector<8x32xf32>
    %cst_13 = arith.constant dense<0.000000e+00> : vector<8xf32>
    %23 = vector.multi_reduction <add>, %22, %cst_13 [1] : vector<8x32xf32> to vector<8xf32>
    %24 = vector.shape_cast %23 : vector<8xf32> to vector<8x1xf32>
    %cst_14 = arith.constant 3.200000e+01 : f32
    %25 = vector.broadcast %cst_14 : f32 to vector<8x1xf32>
    %26 = arith.divf %24, %25 : vector<8x1xf32>
    %cst_15 = arith.constant 9.99999974E-6 : f32
    %27 = vector.broadcast %cst_15 : f32 to vector<8x1xf32>
    %28 = arith.addf %26, %27 : vector<8x1xf32>
    %29 = math.rsqrt %28 : vector<8x1xf32>
    %30 = vector.broadcast %29 : vector<8x1xf32> to vector<8x32xf32>
    %31 = arith.mulf %21, %30 : vector<8x32xf32>
    %c0_16 = arith.constant 0 : index
    %c0_17 = arith.constant 0 : index
    %32 = vector.load %arg6[%c0_16, %c0_17] : memref<1x32xf32, #tpu.memory_space<vmem>>, vector<1x32xf32>
    %33 = vector.broadcast %32 : vector<1x32xf32> to vector<8x32xf32>
    %34 = arith.mulf %31, %33 : vector<8x32xf32>
    %c0_18 = arith.constant 0 : index
    %c0_19 = arith.constant 0 : index
    %35 = vector.load %arg7[%c0_18, %c0_19] : memref<1x32xf32, #tpu.memory_space<vmem>>, vector<1x32xf32>
    %36 = vector.broadcast %35 : vector<1x32xf32> to vector<8x32xf32>
    %37 = arith.addf %34, %36 : vector<8x32xf32>
    %c0_20 = arith.constant 0 : index
    %c0_21 = arith.constant 0 : index
    %38 = vector.load %arg8[%c0_20, %c0_21] : memref<8x32xf32, #tpu.memory_space<vmem>>, vector<8x32xf32>
    tpu.vector_store %arg8[%c0_20, %c0_21], %37 {strides = array<i32>} : memref<8x32xf32, #tpu.memory_space<vmem>>, vector<8x32xf32>,
    return
  }
  func.func @transform_0(%arg0: i32) -> (i32, i32) {
    %c0_i32 = arith.constant 0 : i32
    %c0_i32_0 = arith.constant 0 : i32
    return %arg0, %c0_i32 : i32, i32
  }
  func.func @transform_1(%arg0: i32) -> (i32, i32) {
    %c0_i32 = arith.constant 0 : i32
    %c0_i32_0 = arith.constant 0 : i32
    %c0_i32_1 = arith.constant 0 : i32
    return %c0_i32, %c0_i32_0 : i32, i32
  }
  func.func @transform_2(%arg0: i32) -> (i32, i32) {
    %c0_i32 = arith.constant 0 : i32
    %c0_i32_0 = arith.constant 0 : i32
    %c0_i32_1 = arith.constant 0 : i32
    return %c0_i32, %c0_i32_0 : i32, i32
  }
  func.func @transform_3(%arg0: i32) -> (i32, i32) {
    %c0_i32 = arith.constant 0 : i32
    %c0_i32_0 = arith.constant 0 : i32
    %c0_i32_1 = arith.constant 0 : i32
    return %c0_i32, %c0_i32_0 : i32, i32
  }
  func.func @transform_4(%arg0: i32) -> (i32, i32) {
    %c0_i32 = arith.constant 0 : i32
    %c0_i32_0 = arith.constant 0 : i32
    %c0_i32_1 = arith.constant 0 : i32
    return %c0_i32, %c0_i32_0 : i32, i32
  }
  func.func @transform_5(%arg0: i32) -> (i32, i32) {
    %c0_i32 = arith.constant 0 : i32
    %c0_i32_0 = arith.constant 0 : i32
    %c0_i32_1 = arith.constant 0 : i32
    return %c0_i32, %c0_i32_0 : i32, i32
  }
  func.func @transform_6(%arg0: i32) -> (i32, i32) {
    %c0_i32 = arith.constant 0 : i32
    %c0_i32_0 = arith.constant 0 : i32
    %c0_i32_1 = arith.constant 0 : i32
    return %c0_i32, %c0_i32_0 : i32, i32
  }
  func.func @transform_7(%arg0: i32) -> (i32, i32) {
    %c0_i32 = arith.constant 0 : i32
    %c0_i32_0 = arith.constant 0 : i32
    return %arg0, %c0_i32 : i32, i32
  }
}

</mosaic_0001>

<bundles_post_ra>
// kernel: tpu_custom_call.1
= control target key start
LH: loop header
LB: loop body
LE: loop exit
PB: predicated region body
PF: predicated region fallthrough
CT: control target
= control target key end

     0   :  { %12 = vsyncpa [#allocation3], 0  ;;  %s934_s0 = inlined_call_operand.vmem [shape: f32[16,32], index: 0, kind: input, shape index: {}]   ;;  %s935_s1 = inlined_call_operand.vmem [shape: bf16[32,128], index: 1, kind: input, shape index: {}]   ;;  %s936_s2 = inlined_call_operand.vmem [shape: f32[1,128], index: 2, kind: input, shape index: {}]   ;;  %s937_s3 = inlined_call_operand.vmem [shape: bf16[128,32], index: 3, kind: input, shape index: {}]   ;;  %s938_s4 = inlined_call_operand.vmem [shape: f32[1,32], index: 4, kind: input, shape index: {}]   ;;  %s939_s5 = inlined_call_operand.vmem [shape: f32[1,32], index: 5, kind: input, shape index: {}]   ;;  %s940_s6 = inlined_call_operand.vmem [shape: f32[1,32], index: 6, kind: input, shape index: {}]   ;;  %s941_s7 = inlined_call_operand.hbm [shape: f32[16,32], index: 7, kind: output, shape index: {}]  }
   0x1   :  { %14 = vsyncpa [#allocation3 + $0x1], 0  ;;  %s788_s24 = smov 0   ;;  %s790_s25 = smov 0  }
   0x2   :  { %s792_s26 = smov 0   ;;  %s794_s27 = smov 0  }
   0x3 LB: > { %s809_s28 = sadd.s32 4294967295, %s743_s27   ;;  %s563_s29 = sadd.s32 4294967294, %s743_s27   ;;  %s743_s27 = sphi %s794_s27, %s947_s27   ;;  %s739_s26 = sphi %s792_s26, %s946_s26   ;;  %s735_s25 = sphi %s790_s25, %s945_s25   ;;  %s731_s24 = sphi %s788_s24, %s944_s24  }
   0x4   : > { %s813_s30 = sadd.s32 1, %s743_s27   ;;  %s179_s8 = sadd.s32 1, %s739_s26 }
   0x5   : > { %s176_s9 = ssub.s32 %s743_s27, %s813_s30  ;;  %p189_p0 = scmp.ne.s32.totalorder %s739_s26, %s735_s25 }
   0x6   : > { %p177_p1 = scmp.eq.s32.totalorder %s176_s9, 0  ;;  %p190_p2 = scmp.eq.s32.totalorder %s809_s28, 1 }
   0x7   : > { %p195_p3 = scmp.ne.s32.totalorder %s735_s25, %s731_s24  ;;  %p196_p4 = scmp.eq.s32.totalorder %s563_s29, 1 }
   0x8   : > { %s824_s10 = scalar_select %p177_p1, %s739_s26, %s179_s8  }
   0x9   : > { %p826_p5 = por %p190_p2, %p189_p0  ;;  %p830_p6 = por %p196_p4, %p195_p3 }
   0xa   : > { %p566_p7 = scmp.ge.s32.totalorder %s743_s27, 1  ;;  %p239_p8 = scmp.lt.s32.totalorder %s743_s27, 3 }
   0xc   : > { %p240_p9 = pnand %p566_p7, %p239_p8 }
   0xd   : > { %v669_v0 = vld [vmem:[%s935_s1] sm:$0xff] (!%p240_p9)   ;;  %v745_v1 = vmov (!%p240_p9), 0.0   ;;  %v670_v2 = vld [vmem:[%s935_s1 + $0x8] sm:$0xff] (!%p240_p9)   ;;  %vm746_vm0 = vmmov (!%p240_p9), 0   ;;  %p270_p10 = scmp.lt.s32.totalorder (!%p240_p9), %s809_s28, 1  ;;  %vm300_vm1 = vcmask (!%p240_p9), 261120  }
   0xe   : > { %243 = sbr.rel (%p240_p9) target bundleno = 789 (0x315), region = 48  ;;  %600 = vmatprep.subr.bf16.mxu0 (!%p240_p9), %v745_v1  ;;  %608 = vmatprep.subr.bf16.mxu1 (!%p240_p9), %v745_v1  ;;  %v671_v3 = vld [vmem:[%s937_s3] sm:$0xff] (!%p240_p9)   ;;  %v672_v4 = vld [vmem:[%s937_s3 + $0x8] sm:$0xff] (!%p240_p9)   ;;  %v673_v6 = vld [vmem:[%s937_s3 + $0x10] sm:$0xff] (!%p240_p9)   ;;  %s267_s14 = sand.u32 (!%p240_p9), 1, %s735_s25  }
   0xf   : > { %601 = vmatpush3.bf16.msra.mxu0 (!%p240_p9), %v669_v0  ;;  %604 = vmatprep.mubr.msk.bf16.mxu0 (!%p240_p9), %vm746_vm0, %v745_v1  ;;  %v674_v8 = vld [vmem:[%s937_s3 + $0x18] sm:$0xff] (!%p240_p9)   ;;  %v675_v9 = vld [vmem:[%s937_s3 + $0x20] sm:$0xff] (!%p240_p9)   ;;  %v676_v10 = vld [vmem:[%s937_s3 + $0x28] sm:$0xff] (!%p240_p9)   ;;  %s567_s15 = sshll.u32 (!%p240_p9), %s267_s14, 3  ;;  %s585_s20 = sshll.u32 (!%p240_p9), %s809_s28, 7 }
  0x10   : > { %602 = vmatprep.subr.bf16.mxu0 (!%p240_p9), %v745_v1  ;;  %624 = vmatprep.mubr.msk.bf16.mxu1 (!%p240_p9), %vm746_vm0, %v745_v1  ;;  %v677_v11 = vld [vmem:[%s937_s3 + $0x30] sm:$0xff] (!%p240_p9)   ;;  %v678_v12 = vld [vmem:[%s937_s3 + $0x38] sm:$0xff] (!%p240_p9)   ;;  %v569_v13 = vld [vmem:[%s936_s2] ss:$0 sm:$0xff] (!%p240_p9)  ;;  %s269_s21 = scalar_lea.vmem (!%p240_p9), [#allocation2], %s567_s15  ;;  %s491_s9 = scalar_lea.sflag (!%p240_p9), [#allocation3], %s267_s14 }
  0x11   : > { %609 = vmatpush3.bf16.msra.mxu1 (!%p240_p9), %v671_v3  ;;  %v581_v22 = vld [vmem:[%s938_s4] ss:$0 sm:$0xff] (!%p240_p9) }
  0x12   : > { %610 = vmatprep.subr.bf16.mxu1 (!%p240_p9), %v745_v1  ;;  %v582_v38 = vld [vmem:[%s939_s5] ss:$0 sm:$0xff] (!%p240_p9) }
  0x13   : > { %603 = vmatpush3.bf16.msra.mxu0 (!%p240_p9), %v670_v2  ;;  %v583_v40 = vld [vmem:[%s940_s6] ss:$0 sm:$0xff] (!%p240_p9) }
  0x15   : > { %s271_s19 = scalar_select %p270_p10, %s809_s28, 1  ;;  %611 = vmatpush3.bf16.msra.mxu1 %v672_v4 }
  0x16   : > { %612 = vmatprep.subr.bf16.mxu1 %v745_v1  ;;  %s747_s28 = smov [#allocation2]  }
  0x17   : > { %s568_s22 = sshll.u32 %s271_s19, 3  ;;  %s685_s15 = sshll.u32 %s747_s28, 4  ;;  %s686_s15 = int_to_ptr.vmem [resolvable:$false] %s685_s15 }
  0x18   : > { %s273_s8 = scalar_lea.vmem %s934_s0, %s568_s22  ;;  %s504_s22 = sshll.u32 %s269_s21, 4  ;;  %s893_s22 = int_to_ptr.vmem [resolvable:$true] %s504_s22 }
  0x19   : > { %v275_v5 = vld [vmem:[%s273_s8] sm:$0xff]  ;;  %613 = vmatpush3.bf16.msra.mxu1 %v673_v6  ;;  %s891_s8 = scalar_lea.hbm %s941_s7, %s585_s20  ;;  %s681_s13 = scalar_lea.vmem %s893_s22, 128 }
  0x1a   : > { %v276_v7 = vpack.c.bf16 %v275_v5, %v275_v5  ;;  %614 = vmatprep.subr.bf16.mxu1 %v745_v1  ;;  %p682_p11 = scmp.ne.s32.totalorder %s893_s22, %s681_s13  ;;  %s687_s16 = scalar_lea.vmem %s686_s15, 256 }
  0x1b   : > { %p688_p0 = scmp.lt.s32.totalorder %s893_s22, %s686_s15  ;;  %p689_p1 = scmp.lt.s32.totalorder %s687_s16, %s681_s13 }
  0x1c   : > { %605 = vmatmul.mubr.msk.bf16.vlgmr.msra.gmra.mrb[0].mxu0 %vm300_vm1, %v276_v7  ;;  %p683_p12 = pnand %p682_p11, %p826_p5 }
  0x1d   : > { %615 = vmatpush3.bf16.msra.mxu1 %v674_v8  ;;  %p690_p2 = por %p689_p1, %p688_p0 }
  0x1e   : > { %616 = vmatprep.subr.bf16.mxu1 %v745_v1  ;;  %p684_p13 = pneg %p683_p12 }
  0x20   : > { %p691_p3 = pnand %p690_p2, %p684_p13 }
  0x21   : > { %617 = vmatpush3.bf16.msra.mxu1 %v675_v9 }
  0x22   : > { %618 = vmatprep.subr.bf16.mxu1 %v745_v1 }
  0x25   : > { %619 = vmatpush3.bf16.msra.mxu1 %v676_v10 }
  0x26   : > { %620 = vmatprep.subr.bf16.mxu1 %v745_v1 }
  0x29   : > { %621 = vmatpush3.bf16.msra.mxu1 %v677_v11 }
  0x2a   : > { %622 = vmatprep.subr.bf16.mxu1 %v745_v1 }
  0x2d   : > { %623 = vmatpush3.bf16.msra.mxu1 %v678_v12 }
  0xef   : > { %v338_v14 = vpop.f32.mrb[0].mxu0 }
  0xf0   : > { %v339_v15 = vadd.f32 %v569_v13, %v338_v14  ;;  %v606_v16 = vpop.f32.mrb[1].mxu0 }
  0xf1   : > { %v341_v17 = vpop.f32.mrb[2].mxu0 }
  0xf2   : > { %v344_v18 = vmax.f32 %v339_v15, 0.0  ;;  %v607_v19 = vpop.f32.mrb[3].mxu0 }
  0xf4   : > { %v345_v20 = vpack.c.bf16 %v344_v18, %v344_v18 }
  0xf6   : > { %625 = vmatmul.mubr.bf16.vlgmr.msra.gmra.mrb[0].mxu1 %v345_v20 }
 0x1c9   : > { %v444_v21 = vpop.f32.mrb[0].mxu1 }
 0x1ca   : > { %v450_v23 = vadd.f32 %v444_v21, %v275_v5  ;;  %v626_v24 = vpop.f32.mrb[1].mxu1 }
 0x1cb   : > { %v447_v25 = vpop.f32.mrb[2].mxu1 }
 0x1cc   : > { %v627_v26 = vpop.f32.mrb[3].mxu1  ;;  %v458_v27 = vadd.f32 %v581_v22, %v450_v23 }
 0x1ce   : > { %v459_v28 = vsel %vm300_vm1, %v458_v27, 0.0 }
 0x1cf   : > { %460 = vadd.xlane.f32.xlu0 %v459_v28 }
 0x25c   : > { %v461_v29 = vpop.xlane.xlu0 %460 }
 0x25d   : > { %v463_v30 = vmul.f32 0.03125, %v461_v29 }
 0x25f   : > { %v464_v31 = vsub.f32 %v458_v27, %v463_v30 }
 0x261   : > { %v465_v32 = vmul.f32 %v464_v31, %v464_v31 }
 0x263   : > { %v466_v33 = vsel %vm300_vm1, %v465_v32, 0.0 }
 0x264   : > { %467 = vadd.xlane.f32.xlu0 %v466_v33 }
 0x2f1   : > { %v468_v34 = vpop.xlane.xlu0 %467 }
 0x2f2   : > { %v469_v35 = vmul.f32 0.03125, %v468_v34 }
 0x2f4   : > { %v470_v36 = vadd.f32 1e-05, %v469_v35 }
 0x2f6   : > { %679 = vrsqrt.f32 %v470_v36 }
 0x300   : > { %v680_v37 = vpop.eup %679 }
 0x301   : > { %v472_v39 = vmul.f32 %v680_v37, %v464_v31 }
 0x303   : > { %v480_v41 = vmul.f32 %v582_v38, %v472_v39 }
 0x305   : > { %v488_v42 = vadd.f32 %v583_v40, %v480_v41 }
 0x307   : > { %489 = vst.msk [vmem:[%s269_s21] sm:$0xff] %vm300_vm1, %v488_v42 }
 0x308   : > { %694 = shalt.err (!%p691_p3)
}
 0x309   : > { %s695_s14 = scalar_lea.hbm %s891_s8, 128  ;;  %s699_s19 = scalar_lea.hbm %s941_s7, 256 }
 0x30a   : > { %p696_p4 = scmp.ne.s32.totalorder %s891_s8, %s695_s14  ;;  %p700_p9 = scmp.lt.u32.totalorder %s891_s8, %s941_s7 }
 0x30b   : > { %p701_p10 = scmp.lt.u32.totalorder %s699_s19, %s695_s14  ;;  %p703_p12 = scmp.lt.u32.totalorder %s695_s14, %s891_s8 }
 0x30c   : > { %p697_p7 = pnand %p696_p4, %p826_p5 }
 0x30d   : > { %p702_p11 = por %p701_p10, %p700_p9 }
 0x30e   : > { %p698_p8 = pneg %p697_p7 }
 0x30f   : > { %p704_p13 = por %p703_p12, %p702_p11 }
 0x311   : > { %p705_p0 = pnand %p704_p13, %p698_p8 }
 0x313   : > { %708 = shalt.err (!%p705_p0)
}
 0x314   : > { %628 = dma.vmem_to_hbm [thread:$0]  (%p826_p5), %s893_s22, 128, %s891_s8, %s491_s9  }
 0x315 PF: > { %p634_p1 = scmp.ge.s32.totalorder %s743_s27, 2  ;;  %s516_s23 = sand.u32 1, %s731_s24  }
 0x316   : > { %s517_s29 = scalar_lea.sflag [#allocation3], %s516_s23 }
 0x317   : > { %p631_p2 = pnand %p634_p1, %p830_p6 }
 0x319   : > { %726 = dma.done.wait (!%p631_p2), %s517_s29, 128  }
 0x31a   : > { %728 = vsyncadd (!%p631_p2), %s517_s29, 4294967168  ;;  %p17_p3 = scmp.ge.s32.totalorder %s813_s30, 4   ;;  %s944_s24 = smov %s735_s25 }
 0x31b   : > { %s945_s25 = smov %s739_s26  ;;  %s946_s26 = smov %s824_s10 }
 0x31c   : > { %s947_s27 = smov %s813_s30  ;;  %19 = sbr.rel (!%p17_p3) target bundleno = 3 (0x3), region = 83 }
 0x323   :  { %522 = vsyncpa [#allocation3], 1 }
 0x324   :  { %524 = vsyncpa [#allocation3 + $0x1], 1 }

</bundles_post_ra>
